<compile_context>
chip_gen: v7x
topology: tpu7x:2x2x1
jax: 0.10.0
libtpu: 0.0.40
codegen_flags: <defaults>
</compile_context>

<pallas_src>
import functools

import jax
import jax.numpy as jnp
from jax.experimental import pallas as pl
from jax.experimental.pallas import tpu as pltpu

_LANES = 128


def _largest_small_divisor(n, cap=4):
    """Largest d in [2, cap] dividing n, else 1 (used for the parallel spatial split)."""
    for d in range(min(cap, n), 1, -1):
        if n % d == 0:
            return d
    return 1


# ---------------------------------------------------------------------------
# Streaming kernel: grid = (B, S_outer, S_inner, C); C innermost so the
# (channel-broadcast) targets tile is re-used across channels without
# re-fetching from HBM.  Weights are read as scalars from SMEM.
# ---------------------------------------------------------------------------
def _wmse_stream_kernel(w_ref, o_ref, t_ref, out_ref, acc_ref, *,
                        n_inner, tile_rows, n_rows, mask_tail):
    si = pl.program_id(2)
    c = pl.program_id(3)

    @pl.when((si == 0) & (c == 0))
    def _():
        acc_ref[...] = jnp.zeros_like(acc_ref)

    diff = o_ref[...].astype(jnp.float32) - t_ref[...].astype(jnp.float32)
    # Scalar SMEM read; broadcasts over the (tile_rows, wlast) tile on the VPU.
    contrib = w_ref[c] * (diff * diff)
    if mask_tail:
        # Ragged last row-tile: OOB block reads are garbage (not zero), so the
        # mask must be applied to the final contribution before accumulation.
        so = pl.program_id(1)
        row0 = (so * n_inner + si) * tile_rows
        rows = jax.lax.broadcasted_iota(jnp.int32, contrib.shape, 0) + row0
        contrib = jnp.where(rows < n_rows, contrib, 0.0)
    acc_ref[...] += contrib

    @pl.when((si == n_inner - 1) & (c == pl.num_programs(3) - 1))
    def _():
        # One cross-lane/sublane reduction per (b, s_outer), outside the hot loop.
        out_ref[...] = jnp.sum(acc_ref[...], axis=(0, 1), keepdims=True)


# ---------------------------------------------------------------------------
# Small-hw fast path: B and C folded into the sublane axis of a (R, 128) slab;
# weights applied as a precomputed per-row (tile_rows, 1) column.
# ---------------------------------------------------------------------------
def _wmse_fold_kernel(wcol_ref, o_ref, t_ref, out_ref, acc_ref, *,
                      n_inner, tile_rows, n_rows, mask_tail):
    si = pl.program_id(1)

    @pl.when(si == 0)
    def _():
        acc_ref[...] = jnp.zeros_like(acc_ref)

    diff = o_ref[...].astype(jnp.float32) - t_ref[...].astype(jnp.float32)
    contrib = wcol_ref[...] * (diff * diff)        # (tile_rows,1) * (tile_rows,128)
    if mask_tail:
        so = pl.program_id(0)
        row0 = (so * n_inner + si) * tile_rows
        rows = jax.lax.broadcasted_iota(jnp.int32, contrib.shape, 0) + row0
        contrib = jnp.where(rows < n_rows, contrib, 0.0)
    acc_ref[...] += contrib

    @pl.when(si == n_inner - 1)
    def _():
        out_ref[...] = jnp.sum(acc_ref[...], axis=(0, 1), keepdims=True)


def weighted_mse_loss(outputs, targets, weights, *, max_tile_rows=2048):
    """mean(weights * (outputs - targets) ** 2) for NCHW tensors.

    `targets` may have a broadcastable (size-1) channel dim (torch expand_as);
    `weights` must be scalar or per-channel: (), (C,), (C,1,1) or (1,C,1,1).
    max_tile_rows=2048 keeps the double-buffered working set ~5-6 MiB (safe
    under v5e's 16 MiB default scoped VMEM); raise to 4096 on v7x for ~1-2 MiB
    bigger tiles if desired.
    """
    B, C, H, W = outputs.shape
    hw = H * W
    n_elem = B * C * hw
    itemsize = jnp.dtype(outputs.dtype).itemsize
    lanes = _LANES

    # --- per-channel weights -> flat (C,) f32, with an explicit shape check ---
    # TODO(synk): weights with spatial or per-batch extent would need a full
    # weight stream; only scalar / per-channel weights are supported here.
    w_arr = jnp.asarray(weights, jnp.float32)
    if w_arr.size == 1:
        w_c = jnp.broadcast_to(w_arr.reshape(()), (C,))
    elif w_arr.shape in ((C,), (C, 1, 1), (1, C, 1, 1)):
        w_c = w_arr.reshape(C)
    else:
        raise ValueError(
            f"unsupported weights shape {w_arr.shape}; expected scalar, "
            f"({C},), ({C},1,1) or (1,{C},1,1)")

    # --- targets: keep the broadcast channel dim at size 1 where possible ---
    tgt_c = targets.shape[-3] if targets.ndim >= 3 else 1
    tc = 1 if tgt_c == 1 else C
    targets4 = jnp.broadcast_to(targets, (B, tc, H, W))

    s_raw = hw // lanes

    # ======================================================================
    # Fast path: per-channel slab is tiny -> fold B*C into the sublane axis so
    # bytes/grid-step are large (fixed per-step overhead otherwise dominates).
    # Giving up targets-reuse costs at most 2x targets bytes; a clear net win
    # in this regime.
    # ======================================================================
    if hw % lanes == 0 and s_raw <= max(1, max_tile_rows // 8):
        r_total = B * C * s_raw
        o2 = outputs.reshape(r_total, lanes)
        t2 = jnp.broadcast_to(targets4, (B, C, H, W)).reshape(r_total, lanes)
        wcol = jnp.broadcast_to(w_c.reshape(1, C, 1),
                                (B, C, s_raw)).reshape(r_total, 1)

        if r_total <= max_tile_rows:
            tile_rows, n_tiles = r_total, 1          # full extent: always legal
        else:
            tile_rows = (max_tile_rows // 8) * 8
            n_tiles = pl.cdiv(r_total, tile_rows)
        mask_tail = (n_tiles > 1) and (r_total % tile_rows != 0)
        n_outer = _largest_small_divisor(n_tiles) if n_tiles > 1 else 1
        n_inner = n_tiles // n_outer

        kernel = functools.partial(_wmse_fold_kernel, n_inner=n_inner,
                                   tile_rows=tile_rows, n_rows=r_total,
                                   mask_tail=mask_tail)
        row_idx = lambda so, si: (so * n_inner + si, 0)

        partials = pl.pallas_call(
            kernel,
            out_shape=jax.ShapeDtypeStruct((n_outer, 1, 1), jnp.float32),
            grid_spec=pltpu.PrefetchScalarGridSpec(
                num_scalar_prefetch=0,
                grid=(n_outer, n_inner),
                in_specs=[
                    pl.BlockSpec((tile_rows, 1), row_idx),      # per-row weight
                    pl.BlockSpec((tile_rows, lanes), row_idx),  # outputs
                    pl.BlockSpec((tile_rows, lanes), row_idx),  # targets
                ],
                out_specs=pl.BlockSpec((None, 1, 1), lambda so, si: (so, 0, 0)),
                scratch_shapes=[pltpu.VMEM((tile_rows, lanes), jnp.float32)],
            ),
            compiler_params=pltpu.CompilerParams(
                dimension_semantics=("parallel", "arbitrary")),
            cost_estimate=pl.CostEstimate(
                flops=4 * n_elem, transcendentals=0,
                bytes_accessed=2 * n_elem * itemsize + r_total * 4),
        )(wcol, o2, t2)
        return jnp.sum(partials) / n_elem

    # ======================================================================
    # Streaming path: outputs streamed exactly once, targets re-used across
    # the innermost C axis, per-channel weight read from SMEM.
    # ======================================================================
    if hw % lanes == 0:
        # Lane-dense view of the spatial dims (no padding needed).
        n_rows, wlast = s_raw, lanes
        o4 = outputs.reshape(B, C, n_rows, wlast)
        t4 = targets4.reshape(B, tc, n_rows, wlast)
    else:
        # No jnp.pad: tile directly over (H, W).  Full-extent W is always a
        # legal minor block dim; the ragged H tail (if any) is masked in-kernel.
        n_rows, wlast = H, W
        o4 = outputs
        t4 = targets4

    # Keep ~constant bytes per tile (~1 MiB f32) regardless of the minor dim.
    target_rows = max(8, (max_tile_rows * lanes) // max(wlast, 1))
    if n_rows <= target_rows:
        tile_rows, n_tiles = n_rows, 1               # full extent: always legal
    else:
        tile_rows = max(8, (target_rows // 8) * 8)
        n_tiles = pl.cdiv(n_rows, tile_rows)
    mask_tail = (n_tiles > 1) and (n_rows % tile_rows != 0)

    # Parallel outer spatial split so megacore utilization doesn't depend on B.
    n_outer = _largest_small_divisor(n_tiles) if (B < 4 and n_tiles > 1) else 1
    n_inner = n_tiles // n_outer

    kernel = functools.partial(_wmse_stream_kernel, n_inner=n_inner,
                               tile_rows=tile_rows, n_rows=n_rows,
                               mask_tail=mask_tail)

    o_idx = lambda b, so, si, c: (b, c, so * n_inner + si, 0)
    if tc == C:
        t_idx = lambda b, so, si, c: (b, c, so * n_inner + si, 0)
    else:  # channel-broadcast targets: same HBM tile re-used across the C axis
        t_idx = lambda b, so, si, c: (b, 0, so * n_inner + si, 0)

    tgt_bytes = B * tc * hw * jnp.dtype(targets4.dtype).itemsize
    partials = pl.pallas_call(
        kernel,
        out_shape=jax.ShapeDtypeStruct((B, n_outer, 1, 1), jnp.float32),
        grid_spec=pltpu.PrefetchScalarGridSpec(
            num_scalar_prefetch=0,
            grid=(B, n_outer, n_inner, C),
            in_specs=[
                # whole (C,) weight vector in SMEM; scalar read per step,
                # no per-step VMEM DMA / extra pipelined buffer.
                pl.BlockSpec(memory_space=pltpu.MemorySpace.SMEM),
                pl.BlockSpec((None, None, tile_rows, wlast), o_idx),
                pl.BlockSpec((None, None, tile_rows, wlast), t_idx),
            ],
            out_specs=pl.BlockSpec((None, None, 1, 1),
                                   lambda b, so, si, c: (b, so, 0, 0)),
            scratch_shapes=[pltpu.VMEM((tile_rows, wlast), jnp.float32)],
        ),
        compiler_params=pltpu.CompilerParams(
            dimension_semantics=("parallel", "parallel", "arbitrary", "arbitrary")),
        cost_estimate=pl.CostEstimate(
            flops=4 * n_elem, transcendentals=0,
            bytes_accessed=n_elem * itemsize + tgt_bytes + C * 4),
    )(w_c, o4, t4)
    return jnp.sum(partials) / n_elem


if __name__ == "__main__":
    key = jax.random.PRNGKey(0)
    k_out, k_tgt, k_out2, k_tgt2 = jax.random.split(key, 4)

    # --- case 1: lane-dense fold path (H*W % 128 == 0, broadcast targets) ---
    B, C, H, W = 2, 4, 16, 16
    outputs = jax.random.normal(k_out, (B, C, H, W), dtype=jnp.float32)
    targets = jax.random.normal(k_tgt, (B, 1, H, W), dtype=jnp.float32)
    weights = (jnp.arange(1, C + 1, dtype=jnp.float32) / C).reshape(1, C, 1, 1)

    loss = weighted_mse_loss(outputs, targets, weights)
    jax.block_until_ready(loss)
    ref = jnp.mean(weights * (outputs - jnp.broadcast_to(targets, outputs.shape)) ** 2)
    assert jnp.allclose(loss, ref, rtol=1e-5, atol=1e-6), (loss, ref)

    # --- case 2: streaming path with ragged spatial dims (no padding pass) ---
    B2, C2, H2, W2 = 1, 3, 20, 20
    outputs2 = jax.random.normal(k_out2, (B2, C2, H2, W2), dtype=jnp.float32)
    targets2 = jax.random.normal(k_tgt2, (B2, C2, H2, W2), dtype=jnp.float32)
    weights2 = jnp.array([0.5, 1.0, 2.0], dtype=jnp.float32)

    loss2 = weighted_mse_loss(outputs2, targets2, weights2)
    jax.block_until_ready(loss2)
    ref2 = jnp.mean(weights2.reshape(1, C2, 1, 1) * (outputs2 - targets2) ** 2)
    assert jnp.allclose(loss2, ref2, rtol=1e-5, atol=1e-6), (loss2, ref2)

    print("KERNEL_OK")
</pallas_src>

<mosaic_0001>
module attributes {stable_mosaic.version = 11 : i64} {
  func.func @_wmse_fold_kernel(%arg0: i32, %arg1: i32, %arg2: memref<16x1xf32, #tpu.memory_space<vmem>>, %arg3: memref<16x128xf32, #tpu.memory_space<vmem>>, %arg4: memref<16x128xf32, #tpu.memory_space<vmem>>, %arg5: memref<1x1x1xf32, #tpu.memory_space<vmem>>, %arg6: memref<16x128xf32, #tpu.memory_space<vmem>>) attributes {dimension_semantics = [#tpu.dimension_semantics<parallel>, #tpu.dimension_semantics<arbitrary>], iteration_bounds = array<i64: 1, 1>, scalar_prefetch = 0 : i64, scratch_operands = 1 : i64, tpu.core_type = #tpu.core_type<tc>, window_params = [{transform_indices = @transform_0, window_bounds = array<i64: 16, 1>}, {transform_indices = @transform_1, window_bounds = array<i64: 16, 128>}, {transform_indices = @transform_2, window_bounds = array<i64: 16, 128>}, {transform_indices = @transform_3, window_bounds = array<i64: 1, 1, 1>}]} {
    %c0_i32 = arith.constant 0 : i32
    %0 = arith.cmpi eq, %arg1, %c0_i32 : i32
    %1 = arith.extui %0 : i1 to i32
    %c0_i32_0 = arith.constant 0 : i32
    %2 = arith.cmpi ne, %1, %c0_i32_0 : i32
    scf.if %2 {
      %cst = arith.constant 0.000000e+00 : f32
      %16 = vector.broadcast %cst : f32 to vector<16x128xf32>
      %c0_12 = arith.constant 0 : index
      %c0_13 = arith.constant 0 : index
      %17 = vector.load %arg6[%c0_12, %c0_13] : memref<16x128xf32, #tpu.memory_space<vmem>>, vector<16x128xf32>
      tpu.vector_store %arg6[%c0_12, %c0_13], %16 {strides = array<i32>} : memref<16x128xf32, #tpu.memory_space<vmem>>, vector<16x128xf32>,
    } else {
    }
    %c0 = arith.constant 0 : index
    %c0_1 = arith.constant 0 : index
    %3 = vector.load %arg3[%c0, %c0_1] : memref<16x128xf32, #tpu.memory_space<vmem>>, vector<16x128xf32>
    %c0_2 = arith.constant 0 : index
    %c0_3 = arith.constant 0 : index
    %4 = vector.load %arg4[%c0_2, %c0_3] : memref<16x128xf32, #tpu.memory_space<vmem>>, vector<16x128xf32>
    %5 = arith.subf %3, %4 : vector<16x128xf32>
    %c0_4 = arith.constant 0 : index
    %c0_5 = arith.constant 0 : index
    %6 = vector.load %arg2[%c0_4, %c0_5] : memref<16x1xf32, #tpu.memory_space<vmem>>, vector<16x1xf32>
    %7 = arith.mulf %5, %5 : vector<16x128xf32>
    %8 = vector.broadcast %6 : vector<16x1xf32> to vector<16x128xf32>
    %9 = arith.mulf %8, %7 : vector<16x128xf32>
    %c0_6 = arith.constant 0 : index
    %c0_7 = arith.constant 0 : index
    %10 = vector.load %arg6[%c0_6, %c0_7] : memref<16x128xf32, #tpu.memory_space<vmem>>, vector<16x128xf32>
    %11 = arith.addf %10, %9 : vector<16x128xf32>
    %c0_8 = arith.constant 0 : index
    %c0_9 = arith.constant 0 : index
    %12 = vector.load %arg6[%c0_8, %c0_9] : memref<16x128xf32, #tpu.memory_space<vmem>>, vector<16x128xf32>
    tpu.vector_store %arg6[%c0_8, %c0_9], %11 {strides = array<i32>} : memref<16x128xf32, #tpu.memory_space<vmem>>, vector<16x128xf32>,
    %c0_i32_10 = arith.constant 0 : i32
    %13 = arith.cmpi eq, %arg1, %c0_i32_10 : i32
    %14 = arith.extui %13 : i1 to i32
    %c0_i32_11 = arith.constant 0 : i32
    %15 = arith.cmpi ne, %14, %c0_i32_11 : i32
    scf.if %15 {
      %c0_12 = arith.constant 0 : index
      %c0_13 = arith.constant 0 : index
      %16 = vector.load %arg6[%c0_12, %c0_13] : memref<16x128xf32, #tpu.memory_space<vmem>>, vector<16x128xf32>
      %17 = vector.shape_cast %16 : vector<16x128xf32> to vector<1x16x128xf32>
      %cst = arith.constant dense<0.000000e+00> : vector<1xf32>
      %18 = vector.multi_reduction <add>, %17, %cst [1, 2] : vector<1x16x128xf32> to vector<1xf32>
      %19 = vector.shape_cast %18 : vector<1xf32> to vector<1x1x1xf32>
      %20 = vector.extract %19[0, 0, 0] : f32 from vector<1x1x1xf32>
      %21 = vector.broadcast %20 : f32 to vector<1x1xf32>
      %c0_14 = arith.constant 0 : index
      %c0_15 = arith.constant 0 : index
      %c0_16 = arith.constant 0 : index
      %22 = vector.load %arg5[%c0_14, %c0_15, %c0_16] : memref<1x1x1xf32, #tpu.memory_space<vmem>>, vector<1x1x1xf32>
      %23 = vector.shape_cast %22 : vector<1x1x1xf32> to vector<1x1xf32>
      %24 = vector.shape_cast %21 : vector<1x1xf32> to vector<1x1x1xf32>
      tpu.vector_store %arg5[%c0_14, %c0_15, %c0_16], %24 {strides = array<i32>} : memref<1x1x1xf32, #tpu.memory_space<vmem>>, vector<1x1x1xf32>,
    } else {
    }
    return
  }
  func.func @transform_0(%arg0: i32, %arg1: i32) -> (i32, i32) {
    %c1_i32 = arith.constant 1 : i32
    %0 = arith.muli %arg0, %c1_i32 : i32
    %1 = arith.addi %0, %arg1 : i32
    %c0_i32 = arith.constant 0 : i32
    %c0_i32_0 = arith.constant 0 : i32
    return %1, %c0_i32 : i32, i32
  }
  func.func @transform_1(%arg0: i32, %arg1: i32) -> (i32, i32) {
    %c1_i32 = arith.constant 1 : i32
    %0 = arith.muli %arg0, %c1_i32 : i32
    %1 = arith.addi %0, %arg1 : i32
    %c0_i32 = arith.constant 0 : i32
    %c0_i32_0 = arith.constant 0 : i32
    return %1, %c0_i32 : i32, i32
  }
  func.func @transform_2(%arg0: i32, %arg1: i32) -> (i32, i32) {
    %c1_i32 = arith.constant 1 : i32
    %0 = arith.muli %arg0, %c1_i32 : i32
    %1 = arith.addi %0, %arg1 : i32
    %c0_i32 = arith.constant 0 : i32
    %c0_i32_0 = arith.constant 0 : i32
    return %1, %c0_i32 : i32, i32
  }
  func.func @transform_3(%arg0: i32, %arg1: i32) -> (i32, i32, i32) {
    %c0_i32 = arith.constant 0 : i32
    %c0_i32_0 = arith.constant 0 : i32
    %c0_i32_1 = arith.constant 0 : i32
    return %arg0, %c0_i32, %c0_i32_0 : i32, i32, i32
  }
}

</mosaic_0001>

<bundles_post_ra>
// kernel: tpu_custom_call.1
= control target key start
LH: loop header
LB: loop body
LE: loop exit
PB: predicated region body
PF: predicated region fallthrough
CT: control target
= control target key end

     0   :  { %8 = vsyncpa [#allocation4], 0  ;;  %s275_s0 = inlined_call_operand.vmem [shape: f32[16,1], index: 0, kind: input, shape index: {}]   ;;  %s276_s1 = inlined_call_operand.vmem [shape: f32[16,128], index: 1, kind: input, shape index: {}]   ;;  %s277_s2 = inlined_call_operand.hbm [shape: f32[16,128], index: 2, kind: input, shape index: {}]   ;;  %s278_s3 = inlined_call_operand.hbm [shape: f32[1,1,1], index: 3, kind: output, shape index: {}]  }
   0x1   :  { %9 = vsyncpa [#allocation5], 0  ;;  %s214_s12 = smov [#allocation3]   ;;  %s166_s16 = scalar_lea.hbm %s277_s2, 256 }
   0x2   :  { %s39_s13 = sshll.u32 %s214_s12, 4  ;;  %p167_p0 = scmp.ne.s32.totalorder %s277_s2, %s166_s16  ;;  %s40_s13 = int_to_ptr.vmem [resolvable:$true] %s39_s13 }
   0x3   :  { %p170_p1 = scmp.lt.u32.totalorder %s166_s16, %s277_s2 }
   0x5   :  { %p172_p2 = pnand %p170_p1, %p167_p0 }
   0x7   :  { %175 = shalt.err (!%p172_p2)
}
   0x8   :  { %s176_s21 = scalar_lea.vmem %s40_s13, 256  ;;  %p181_p4 = scmp.lt.s32.totalorder %s40_s13, %s40_s13 }
   0x9   :  { %p177_p3 = scmp.ne.s32.totalorder %s40_s13, %s176_s21  ;;  %p182_p5 = scmp.lt.s32.totalorder %s176_s21, %s176_s21 }
   0xb   :  { %p183_p6 = por %p182_p5, %p181_p4 }
   0xd   :  { %p184_p7 = pnand %p183_p6, %p177_p3 }
   0xf   :  { %187 = shalt.err (!%p184_p7)
}
  0x10   :  { %s215_s22 = smov 128   ;;  %s216_s23 = smov 8  }
  0x11   :  { %45 = dma.hbm_to_vmem [thread:$0]  %s277_s2, 256, %s40_s13, [#allocation4], %s215_s22, %s215_s22, %s216_s23  }
  0x12   :  { %210 = dma.done.wait [#allocation4], 256  }
  0x13   :  { %211 = vsyncadd [#allocation4], 4294967040  ;;  %v217_v0 = vmov 0   ;;  %v91_v1 = vld [vmem:[%s275_s0] sm:$0xff]  ;;  %v92_v2 = vld [vmem:[%s275_s0 + $0x8] sm:$0xff]  ;;  %s218_s0 = smov [#allocation6]  }
  0x14   :  { %165 = vset.pattern.permute.xlu0 %v217_v0  ;;  %v85_v3 = vld [vmem:[%s276_s1] sm:$0xff]  ;;  %v86_v5 = vld [vmem:[%s276_s1 + $0x8] sm:$0xff]  ;;  %s137_s1 = sshll.u32 %s218_s0, 4  ;;  %vm129_vm0 = vcmask 0   ;;  %s138_s1 = int_to_ptr.vmem [resolvable:$true] %s137_s1 }
  0x15   :  { %97 = vperm.xlu0 %165, %v91_v1   ;;  %v87_v4 = vld [vmem:[#allocation3] sm:$0xff]  ;;  %v88_v6 = vld [vmem:[#allocation3 + $0x8] sm:$0xff]  ;;  %s188_s7 = scalar_lea.vmem %s138_s1, 16  ;;  %s192_s8 = scalar_lea.vmem %s138_s1, 32 }
  0x16   :  { %v89_v7 = vsub.f32 %v85_v3, %v87_v4  ;;  %v90_v8 = vsub.f32 %v86_v5, %v88_v6  ;;  %p189_p8 = scmp.ne.s32.totalorder %s138_s1, %s188_s7  ;;  %p193_p9 = scmp.lt.s32.totalorder %s138_s1, %s138_s1 }
  0x17   :  { %p194_p10 = scmp.lt.s32.totalorder %s192_s8, %s188_s7 }
  0x18   :  { %v93_v10 = vmul.f32 %v89_v7, %v89_v7  ;;  %v94_v11 = vmul.f32 %v90_v8, %v90_v8 }
  0x19   :  { %102 = vperm.xlu0 %165, %v92_v2   ;;  %p195_p11 = por %p194_p10, %p193_p9 }
  0x1b   :  { %p196_p12 = pnand %p195_p11, %p189_p8 }
  0x94   :  { %v98_v9 = vpop.permute.xlu0 %97 }
  0x95   :  { %v105_v13 = vmul.f32 %v98_v9, %v93_v10 }
  0x98   :  { %v103_v12 = vpop.permute.xlu0 %102 }
  0x99   :  { %v106_v14 = vmul.f32 %v103_v12, %v94_v11 }
  0x9b   :  { %v118_v15 = vadd.f32 %v106_v14, %v105_v13 }
  0x9d   :  { %119 = vadd.xlane.f32.xlu1 %v118_v15 }
 0x12a   :  { %v120_v16 = vpop.xlane.xlu1 %119 }
 0x12b   :  { %v121_v17 = vrot.slane %v120_v16, 4 }
 0x12d   :  { %v122_v18 = vadd.f32 %v121_v17, %v120_v16 }
 0x12f   :  { %v123_v19 = vrot.slane %v122_v18, 2 }
 0x131   :  { %v124_v20 = vadd.f32 %v123_v19, %v122_v18 }
 0x133   :  { %v125_v21 = vrot.slane %v124_v20, 1 }
 0x135   :  { %v126_v22 = vadd.f32 %v125_v21, %v124_v20 }
 0x137   :  { %158 = vpush %v126_v22 }
 0x168   :  { %s159_s6 = spop %158 }
 0x169   :  { %v128_v23 = vstv %s159_s6 }
 0x16a   :  { %130 = vst.msk [vmem:[#allocation6] sm:$0x1] %vm129_vm0, %v128_v23 }
 0x16b   :  { %199 = shalt.err (!%p196_p12)
}
 0x16c   :  { %s200_s11 = scalar_lea.hbm %s278_s3, 16 }
 0x16d   :  { %p201_p13 = scmp.ne.s32.totalorder %s278_s3, %s200_s11  ;;  %p204_p0 = scmp.lt.u32.totalorder %s200_s11, %s278_s3 }
 0x16f   :  { %p206_p1 = pnand %p204_p0, %p201_p13 }
 0x171   :  { %209 = shalt.err (!%p206_p1)
}
 0x172   :  { %140 = dma.vmem_to_hbm [thread:$0]  %s138_s1, 16, %s278_s3, [#allocation5]  }
 0x173   :  { %212 = dma.done.wait [#allocation5], 16  }
 0x174   :  { %213 = vsyncadd [#allocation5], 4294967280 }
 0x175   :  { %144 = vsyncpa [#allocation4], 1 }
 0x176   :  { %145 = vsyncpa [#allocation5], 1 }

</bundles_post_ra>
